<compile_context>
chip_gen: v7x
topology: tpu7x:2x2x1
jax: 0.10.0
libtpu: 0.0.40
codegen_flags: <defaults>
</compile_context>

<pallas_src>
import numpy as np
import jax
import jax.numpy as jnp
from jax.experimental import pallas as pl
from jax.experimental.pallas import tpu as pltpu


def _round_up(x, m):
    return ((x + m - 1) // m) * m


_VMEM_BUDGET = 12 * 1024 * 1024          # conservative per-call tile budget (fits v5e/v6e/v7x)
_COMPILER_VMEM_LIMIT = 32 * 1024 * 1024  # explicit scoped-VMEM limit (<= v7x physical 64 MiB)


# ----------------------------------------------------------------------------------------
# Pallas kernels
# ----------------------------------------------------------------------------------------
def _conv_mm_bn_lrelu_kernel(x_ref, w_ref, shift_ref, o_ref):
    # x_ref: (tile_m, K_pad) bf16 im2col patches; w_ref: (K_pad, Cout_pad) bf16 with the
    # folded BN scale already multiplied into its columns; shift_ref: (1, Cout_pad) f32.
    acc = jnp.dot(x_ref[...], w_ref[...], preferred_element_type=jnp.float32)
    y = acc + shift_ref[...]                                  # folded BN shift (+ conv bias), f32
    o_ref[...] = jnp.where(y >= 0, y, 0.01 * y).astype(o_ref.dtype)   # LeakyReLU(0.01)


def _linear_kernel(x_ref, w_ref, b_ref, o_ref, acc_ref):
    k = pl.program_id(2)

    @pl.when(k == 0)
    def _():
        acc_ref[...] = jnp.zeros_like(acc_ref)

    acc_ref[...] += jnp.dot(x_ref[...], w_ref[...], preferred_element_type=jnp.float32)

    @pl.when(k == pl.num_programs(2) - 1)
    def _():
        o_ref[...] = (acc_ref[...] + b_ref[...]).astype(o_ref.dtype)


# ----------------------------------------------------------------------------------------
# Kernel wrappers
# ----------------------------------------------------------------------------------------
def _pick_tile_m(M, K_pad, Cout_pad):
    """Largest 256-aligned M tile whose double-buffered working set fits the VMEM budget."""
    if M <= 256:
        return _round_up(M, 8)            # single tile; bounded, no OOM risk
    for tile in (512, 256, 128, 64, 32, 16, 8):
        need = (2 * tile * K_pad * 2          # 2x bf16 input buffers
                + 2 * tile * Cout_pad * 4     # 2x f32 output buffers
                + K_pad * Cout_pad * 2        # resident bf16 weight
                + Cout_pad * 4)               # resident shift
        if need <= _VMEM_BUDGET:
            return tile
    return 8


def fused_conv_bn_lrelu(x_cols, w_pad, shift_pad, c_out):
    """x_cols: (M, K) f32 im2col patches; w_pad: (K_pad, Cout_pad) bf16 (BN-scaled);
    shift_pad: (1, Cout_pad) f32.  Returns (M, c_out) f32."""
    M, K = x_cols.shape
    K_pad, Cout_pad = w_pad.shape
    tile_m = _pick_tile_m(M, K_pad, Cout_pad)
    M_pad = _round_up(M, tile_m)
    x = jnp.pad(x_cols, ((0, M_pad - M), (0, K_pad - K))).astype(jnp.bfloat16)

    out = pl.pallas_call(
        _conv_mm_bn_lrelu_kernel,
        out_shape=jax.ShapeDtypeStruct((M_pad, Cout_pad), jnp.float32),
        grid=(M_pad // tile_m,),
        in_specs=[
            pl.BlockSpec((tile_m, K_pad), lambda i: (i, 0)),
            pl.BlockSpec((K_pad, Cout_pad), lambda i: (0, 0)),   # weight resident
            pl.BlockSpec((1, Cout_pad), lambda i: (0, 0)),       # shift resident
        ],
        out_specs=pl.BlockSpec((tile_m, Cout_pad), lambda i: (i, 0)),
        compiler_params=pltpu.CompilerParams(
            dimension_semantics=("parallel",),
            vmem_limit_bytes=_COMPILER_VMEM_LIMIT),
    )(x, w_pad, shift_pad)
    return out[:M, :c_out]


def fused_linear(x, w_pad, b_pad, d_out):
    """x: (N, F) f32; w_pad: (F_pad, Dout_pad) bf16; b_pad: (1, Dout_pad) f32.
    Tiled over (N, Dout, F) with an f32 VMEM accumulator over the F (reduction) axis."""
    N, F = x.shape
    F_pad, Dout_pad = w_pad.shape

    tile_n = min(256, _round_up(N, 8))
    N_pad = _round_up(N, tile_n)
    tile_d = 128
    if F_pad % 512 == 0:
        tile_f = 512
    elif F_pad % 256 == 0:
        tile_f = 256
    else:
        tile_f = 128

    xb = jnp.pad(x, ((0, N_pad - N), (0, F_pad - F))).astype(jnp.bfloat16)
    grid = (N_pad // tile_n, Dout_pad // tile_d, F_pad // tile_f)

    out = pl.pallas_call(
        _linear_kernel,
        out_shape=jax.ShapeDtypeStruct((N_pad, Dout_pad), jnp.float32),
        grid=grid,
        in_specs=[
            pl.BlockSpec((tile_n, tile_f), lambda i, j, k: (i, k)),
            pl.BlockSpec((tile_f, tile_d), lambda i, j, k: (k, j)),
            pl.BlockSpec((1, tile_d), lambda i, j, k: (0, j)),
        ],
        out_specs=pl.BlockSpec((tile_n, tile_d), lambda i, j, k: (i, j)),
        scratch_shapes=[pltpu.VMEM((tile_n, tile_d), jnp.float32)],
        compiler_params=pltpu.CompilerParams(
            dimension_semantics=("parallel", "parallel", "arbitrary"),
            vmem_limit_bytes=_COMPILER_VMEM_LIMIT),
    )(xb, w_pad, b_pad)
    return out[:N, :d_out]


# ----------------------------------------------------------------------------------------
# Plain-JAX glue (patch extraction / parameter folding)
# ----------------------------------------------------------------------------------------
def _im2col(x_nhwc, kernel_sz, stride, padding):
    N, H, W, C = x_nhwc.shape
    kh, kw = kernel_sz
    sh, sw = stride
    ph, pw = padding
    Hout = (H + 2 * ph - kh) // sh + 1
    Wout = (W + 2 * pw - kw) // sw + 1
    xp = jnp.pad(x_nhwc, ((0, 0), (ph, ph), (pw, pw), (0, 0)))
    patches = []
    for i in range(kh):
        for j in range(kw):
            patches.append(
                jax.lax.slice(
                    xp,
                    (0, i, j, 0),
                    (N, i + sh * (Hout - 1) + 1, j + sw * (Wout - 1) + 1, C),
                    (1, sh, sw, 1),
                )
            )
    # (N, Hout, Wout, kh*kw, C) -> (N*Hout*Wout, kh*kw*C); K ordered (kh, kw) major, cin minor
    col = jnp.stack(patches, axis=3).reshape(N * Hout * Wout, kh * kw * C)
    return col, Hout, Wout


class ConvEncoderPallas:
    def __init__(self, input_shape, hidden_layers, latent_dim, stride=(2, 2),
                 kernel_sz=(3, 3), padding=(1, 1), AE=False, key=None):
        if key is None:
            key = jax.random.PRNGKey(0)
        self.latent_dim = latent_dim
        self.AE = AE
        self.stride = stride
        self.kernel_sz = kernel_sz
        self.padding = padding
        self.bn_eps = 1e-5

        cin, h, w = input_shape
        layer_dims = [cin] + list(hidden_layers)
        self.enc_h_out, self.enc_w_out = [h], [w]
        self.conv_params = []

        keys = jax.random.split(key, 2 * len(hidden_layers) + 2)
        ki = 0
        for li in range(1, len(layer_dims)):
            c_in, c_out = layer_dims[li - 1], layer_dims[li]
            fan_in = c_in * kernel_sz[0] * kernel_sz[1]
            wconv = jax.random.normal(keys[ki], (c_out, c_in, kernel_sz[0], kernel_sz[1]),
                                      jnp.float32) / np.sqrt(fan_in)
            ki += 1
            bconv = jax.random.normal(keys[ki], (c_out,), jnp.float32) * 0.05
            ki += 1
            gamma = jnp.ones((c_out,), jnp.float32)
            beta = jnp.zeros((c_out,), jnp.float32)
            rmean = jnp.zeros((c_out,), jnp.float32)
            rvar = jnp.ones((c_out,), jnp.float32)
            self.conv_params.append((wconv, bconv, gamma, beta, rmean, rvar))
            self.enc_h_out.append(
                (self.enc_h_out[-1] + 2 * padding[0] - (kernel_sz[0] - 1) - 1) // stride[0] + 1)
            self.enc_w_out.append(
                (self.enc_w_out[-1] + 2 * padding[1] - (kernel_sz[1] - 1) - 1) // stride[1] + 1)

        flat = layer_dims[-1] * self.enc_h_out[-1] * self.enc_w_out[-1]
        out_features = latent_dim if AE else 2 * latent_dim
        self.lin_w = jax.random.normal(keys[ki], (out_features, flat), jnp.float32) / np.sqrt(flat)
        ki += 1
        self.lin_b = jax.random.normal(keys[ki], (out_features,), jnp.float32) * 0.05
        self.out_features = out_features

        # ---------------- kernel-ready (folded / padded / bf16) parameters ----------------
        kh, kw = kernel_sz
        self.conv_kernels = []
        for (wconv, bconv, gamma, beta, rmean, rvar) in self.conv_params:
            c_out, c_in = wconv.shape[0], wconv.shape[1]
            # (Cout, Cin, KH, KW) -> (KH*KW*Cin, Cout), matching im2col K-ordering
            w_mat = jnp.transpose(wconv, (2, 3, 1, 0)).reshape(kh * kw * c_in, c_out)
            scale = gamma / jnp.sqrt(rvar + self.bn_eps)          # eval-mode BN fold
            shift = (bconv - rmean) * scale + beta
            w_scaled = w_mat * scale[None, :]                     # fold BN scale into weights
            K = kh * kw * c_in
            K_pad = _round_up(K, 8)
            Cout_pad = _round_up(c_out, 128)                      # lane-dense output channels
            w_pad = jnp.pad(w_scaled, ((0, K_pad - K), (0, Cout_pad - c_out))).astype(jnp.bfloat16)
            shift_pad = jnp.pad(shift[None, :], ((0, 0), (0, Cout_pad - c_out)))
            self.conv_kernels.append((w_pad, shift_pad, c_out))

        # Fold PyTorch's (C,H,W) flatten order into the Linear weight so activations can stay
        # NHWC end-to-end (no per-call transpose of the full activation tensor).
        c_last, h_last, w_last = layer_dims[-1], self.enc_h_out[-1], self.enc_w_out[-1]
        w_hwc = jnp.transpose(
            self.lin_w.reshape(out_features, c_last, h_last, w_last), (0, 2, 3, 1)
        ).reshape(out_features, flat)
        w_lin = w_hwc.T                                           # (flat, out_features)
        F_pad = _round_up(flat, 128)
        Dout_pad = _round_up(out_features, 128)                   # lane-dense linear output
        self.lin_w_pad = jnp.pad(
            w_lin, ((0, F_pad - flat), (0, Dout_pad - out_features))).astype(jnp.bfloat16)
        self.lin_b_pad = jnp.pad(self.lin_b[None, :], ((0, 0), (0, Dout_pad - out_features)))

    def __call__(self, x_nchw):
        N = x_nchw.shape[0]
        x = jnp.transpose(x_nchw, (0, 2, 3, 1))   # single NCHW -> NHWC boundary transpose
        for (w_pad, shift_pad, c_out) in self.conv_kernels:
            cols, Hout, Wout = _im2col(x, self.kernel_sz, self.stride, self.padding)
            y = fused_conv_bn_lrelu(cols, w_pad, shift_pad, c_out)
            x = y.reshape(N, Hout, Wout, c_out)
        feat = x.reshape(N, -1)                    # NHWC flatten; weight permuted at init
        out = fused_linear(feat, self.lin_w_pad, self.lin_b_pad, self.out_features)
        if self.AE:
            return out
        mu = out[:, : self.latent_dim]
        log_var = out[:, self.latent_dim: 2 * self.latent_dim]
        return mu, log_var


# ----------------------------------------------------------------------------------------
# Pure-JAX f32 reference (for correctness check)
# ----------------------------------------------------------------------------------------
def reference_forward(x_nchw, model):
    x = x_nchw
    pads = [(model.padding[0], model.padding[0]), (model.padding[1], model.padding[1])]
    for (wconv, bconv, gamma, beta, rmean, rvar) in model.conv_params:
        x = jax.lax.conv_general_dilated(
            x, wconv, window_strides=model.stride, padding=pads,
            dimension_numbers=("NCHW", "OIHW", "NCHW"),
            precision=jax.lax.Precision.HIGHEST)
        x = x + bconv[None, :, None, None]
        x = (x - rmean[None, :, None, None]) / jnp.sqrt(rvar[None, :, None, None] + model.bn_eps)
        x = x * gamma[None, :, None, None] + beta[None, :, None, None]
        x = jnp.where(x >= 0, x, 0.01 * x)
    feat = x.reshape(x.shape[0], -1)
    out = feat @ model.lin_w.T + model.lin_b
    if model.AE:
        return out
    return out[:, : model.latent_dim], out[:, model.latent_dim:]


if __name__ == "__main__":
    key = jax.random.PRNGKey(0)
    kx, kp = jax.random.split(key)

    # batch=2, channels=4, spatial=16x16, hidden_layers=[8,16], latent_dim=8
    x = jax.random.normal(kx, (2, 4, 16, 16), jnp.float32)
    model = ConvEncoderPallas(input_shape=(4, 16, 16), hidden_layers=[8, 16],
                              latent_dim=8, key=kp)

    mu, log_var = model(x)
    jax.block_until_ready((mu, log_var))

    mu_ref, lv_ref = reference_forward(x, model)
    assert mu.shape == (2, 8) and log_var.shape == (2, 8)
    # bf16 MXU inputs vs. HIGHEST-precision f32 reference -> slightly looser tolerance.
    assert np.allclose(np.asarray(mu), np.asarray(mu_ref), atol=5e-2, rtol=5e-2)
    assert np.allclose(np.asarray(log_var), np.asarray(lv_ref), atol=5e-2, rtol=5e-2)

    print("KERNEL_OK")
</pallas_src>

<mosaic_0001>
module attributes {stable_mosaic.version = 11 : i64} {
  func.func @_conv_mm_bn_lrelu_kernel(%arg0: i32, %arg1: memref<128x40xbf16, #tpu.memory_space<vmem>>, %arg2: memref<40x128xbf16, #tpu.memory_space<vmem>>, %arg3: memref<1x128xf32, #tpu.memory_space<vmem>>, %arg4: memref<128x128xf32, #tpu.memory_space<vmem>>) attributes {dimension_semantics = [#tpu.dimension_semantics<parallel>], iteration_bounds = array<i64: 1>, scalar_prefetch = 0 : i64, scratch_operands = 0 : i64, tpu.core_type = #tpu.core_type<tc>, window_params = [{transform_indices = @transform_0, window_bounds = array<i64: 128, 40>}, {pipeline_mode = #tpu.pipeline_mode<synchronous>, transform_indices = @transform_1, window_bounds = array<i64: 40, 128>}, {pipeline_mode = #tpu.pipeline_mode<synchronous>, transform_indices = @transform_2, window_bounds = array<i64: 1, 128>}, {transform_indices = @transform_3, window_bounds = array<i64: 128, 128>}]} {
    %c0 = arith.constant 0 : index
    %c0_0 = arith.constant 0 : index
    %0 = vector.load %arg1[%c0, %c0_0] : memref<128x40xbf16, #tpu.memory_space<vmem>>, vector<128x40xbf16>
    %c0_1 = arith.constant 0 : index
    %c0_2 = arith.constant 0 : index
    %1 = vector.load %arg2[%c0_1, %c0_2] : memref<40x128xbf16, #tpu.memory_space<vmem>>, vector<40x128xbf16>
    %cst = arith.constant dense<0.000000e+00> : vector<128x128xf32>
    %2 = tpu.matmul %0, %1, %cst {dimension_numbers = #tpu.dot_dimension_numbers<[1], [0], [0], [1], [0, 0, 1, 1], [], []>} : vector<128x40xbf16>, vector<40x128xbf16>, vector<128x128xf32> -> vector<128x128xf32>
    %c0_3 = arith.constant 0 : index
    %c0_4 = arith.constant 0 : index
    %3 = vector.load %arg3[%c0_3, %c0_4] : memref<1x128xf32, #tpu.memory_space<vmem>>, vector<1x128xf32>
    %4 = vector.broadcast %3 : vector<1x128xf32> to vector<128x128xf32>
    %5 = arith.addf %2, %4 : vector<128x128xf32>
    %cst_5 = arith.constant 0.000000e+00 : f32
    %6 = vector.broadcast %cst_5 : f32 to vector<128x128xf32>
    %7 = arith.cmpf oge, %5, %6 : vector<128x128xf32>
    %cst_6 = arith.constant 0.00999999977 : f32
    %8 = vector.broadcast %cst_6 : f32 to vector<128x128xf32>
    %9 = arith.mulf %8, %5 : vector<128x128xf32>
    %10 = arith.select %7, %5, %9 : vector<128x128xi1>, vector<128x128xf32>
    %c0_7 = arith.constant 0 : index
    %c0_8 = arith.constant 0 : index
    %11 = vector.load %arg4[%c0_7, %c0_8] : memref<128x128xf32, #tpu.memory_space<vmem>>, vector<128x128xf32>
    tpu.vector_store %arg4[%c0_7, %c0_8], %10 {strides = array<i32>} : memref<128x128xf32, #tpu.memory_space<vmem>>, vector<128x128xf32>,
    return
  }
  func.func @transform_0(%arg0: i32) -> (i32, i32) {
    %c0_i32 = arith.constant 0 : i32
    %c0_i32_0 = arith.constant 0 : i32
    return %arg0, %c0_i32 : i32, i32
  }
  func.func @transform_1(%arg0: i32) -> (i32, i32) {
    %c0_i32 = arith.constant 0 : i32
    %c0_i32_0 = arith.constant 0 : i32
    %c0_i32_1 = arith.constant 0 : i32
    return %c0_i32, %c0_i32_0 : i32, i32
  }
  func.func @transform_2(%arg0: i32) -> (i32, i32) {
    %c0_i32 = arith.constant 0 : i32
    %c0_i32_0 = arith.constant 0 : i32
    %c0_i32_1 = arith.constant 0 : i32
    return %c0_i32, %c0_i32_0 : i32, i32
  }
  func.func @transform_3(%arg0: i32) -> (i32, i32) {
    %c0_i32 = arith.constant 0 : i32
    %c0_i32_0 = arith.constant 0 : i32
    return %arg0, %c0_i32 : i32, i32
  }
}

</mosaic_0001>

<bundles_post_ra>
// kernel: tpu_custom_call.1
= control target key start
LH: loop header
LB: loop body
LE: loop exit
PB: predicated region body
PF: predicated region fallthrough
CT: control target
= control target key end

     0   :  { %vm99_vm0 = vcmask 326656   ;;  %vm124_vm1 = vcmask 1043456   ;;  %s501_s0 = inlined_call_operand.vmem [shape: bf16[128,40], index: 0, kind: input, shape index: {}]   ;;  %s502_s1 = inlined_call_operand.vmem [shape: bf16[40,128], index: 1, kind: input, shape index: {}]   ;;  %s503_s2 = inlined_call_operand.vmem [shape: f32[1,128], index: 2, kind: input, shape index: {}]   ;;  %s504_s3 = inlined_call_operand.hbm [shape: f32[128,128], index: 3, kind: output, shape index: {}]  }
   0x1   :  { %v369_v0 = vld [vmem:[%s502_s1] sm:$0xff]   ;;  %v370_v1 = vld [vmem:[%s502_s1 + $0x8] sm:$0xff]   ;;  %v371_v2 = vld [vmem:[%s502_s1 + $0x10] ss:$0 sps:$4 sm:$0xff]  }
   0x2   :  { %336 = vmatprep.subr.bf16.mxu0 %v369_v0  ;;  %358 = vmatprep.subr.bf16.mxu1 %v369_v0  ;;  %v372_v3 = vld [vmem:[%s501_s0] sm:$0xff]   ;;  %v126_v5 = vsel %vm124_vm1, %v371_v2, 0  ;;  %v374_v6 = vld [vmem:[%s501_s0 + $0x8] sm:$0xff]  }
   0x3   :  { %337 = vmatpush3.bf16.msra.mxu0 %v369_v0  ;;  %361 = vmatpush3.bf16.msra.mxu1 %v369_v0  ;;  %v373_v4 = vld [vmem:[%s501_s0 + $0x20] sm:$0xff]   ;;  %v375_v7 = vld [vmem:[%s501_s0 + $0x28] sm:$0xff]  }
   0x4   :  { %338 = vmatprep.subr.bf16.mxu0 %v370_v1  ;;  %359 = vmatprep.subr.bf16.mxu1 %v370_v1 }
   0x5   :  { %342 = vmatprep.mubr.msk.bf16.mxu0 %vm99_vm0, %v372_v3  ;;  %350 = vmatprep.mubr.msk.bf16.mxu1 %vm99_vm0, %v373_v4 }
   0x7   :  { %339 = vmatpush3.bf16.msra.mxu0 %v370_v1  ;;  %362 = vmatpush3.bf16.msra.mxu1 %v370_v1 }
   0x8   :  { %364 = vmatprep.subr.msk.bf16.mxu0 %vm124_vm1, %v371_v2  ;;  %365 = vmatprep.subr.msk.bf16.mxu1 %vm124_vm1, %v371_v2 }
   0x9   :  { %8 = vsyncpa [#allocation3], 0  ;;  %v376_v8 = vld [vmem:[%s501_s0 + $0x10] sm:$0xff]   ;;  %v378_v10 = vld [vmem:[%s501_s0 + $0x18] sm:$0xff]  }
   0xa   :  { %v377_v9 = vld [vmem:[%s501_s0 + $0x30] sm:$0xff]   ;;  %v379_v11 = vld [vmem:[%s501_s0 + $0x38] sm:$0xff]   ;;  %v471_v12 = vld [vmem:[%s503_s2] ss:$0 sm:$0xff]  ;;  %s404_s0 = smov [#allocation2]  }
   0xb   :  { %341 = vmatpush3.bf16.msra.mxu0 %v126_v5  ;;  %363 = vmatpush3.bf16.msra.mxu1 %v126_v5  ;;  %s294_s2 = sshll.u32 %s404_s0, 4  ;;  %s295_s2 = int_to_ptr.vmem [resolvable:$true] %s294_s2 }
   0xc   :  { %s380_s8 = scalar_lea.vmem %s295_s2, 2048  ;;  %p385_p1 = scmp.lt.s32.totalorder %s295_s2, %s295_s2 }
   0xd   :  { %p381_p0 = scmp.ne.s32.totalorder %s295_s2, %s380_s8  ;;  %p386_p2 = scmp.lt.s32.totalorder %s380_s8, %s380_s8 }
   0xe   :  { %343 = vmatmul.mubr.msk.bf16.vlgmr.msra.gmra.mrb[0].mxu0 %vm99_vm0, %v374_v6  ;;  %351 = vmatmul.mubr.msk.bf16.vlgmr.msra.gmra.mrb[0].mxu1 %vm99_vm0, %v375_v7 }
   0xf   :  { %346 = vmatprep.mubr.msk.bf16.mxu0 %vm99_vm0, %v376_v8  ;;  %354 = vmatprep.mubr.msk.bf16.mxu1 %vm99_vm0, %v377_v9  ;;  %p387_p3 = por %p386_p2, %p385_p1 }
  0x11   :  { %p388_p4 = pnand %p387_p3, %p381_p0 }
  0x16   :  { %347 = vmatmul.mubr.msk.bf16.gmra.mrb[4].mxu0 %vm99_vm0, %v378_v10  ;;  %355 = vmatmul.mubr.msk.bf16.gmra.mrb[4].mxu1 %vm99_vm0, %v379_v11 }
  0xe1   :  { %v344_v13 = vpop.f32.mrb[0].mxu0  ;;  %v352_v14 = vpop.f32.mrb[0].mxu1 }
  0xe2   :  { %v171_v15 = vadd.f32 %v344_v13, %v471_v12  ;;  %v203_v16 = vadd.f32 %v352_v14, %v471_v12  ;;  %v162_v17 = vpop.f32.mrb[1].mxu0  ;;  %v194_v18 = vpop.f32.mrb[1].mxu1 }
  0xe3   :  { %v163_v19 = vadd.f32 %v471_v12, %v162_v17  ;;  %v195_v20 = vadd.f32 %v471_v12, %v194_v18  ;;  %v345_v21 = vpop.f32.mrb[2].mxu0  ;;  %v353_v22 = vpop.f32.mrb[2].mxu1 }
  0xe4   :  { %vm227_vm2 = vcmp.ge.f32.partialorder %v171_v15, 0.0  ;;  %v243_v23 = vmul.f32 0.01, %v171_v15  ;;  %vm235_vm3 = vcmp.ge.f32.partialorder %v203_v16, 0.0  ;;  %v251_v24 = vmul.f32 0.01, %v203_v16 }
  0xe5   :  { %vm225_vm4 = vcmp.ge.f32.partialorder %v163_v19, 0.0  ;;  %v241_v25 = vmul.f32 0.01, %v163_v19  ;;  %vm233_vm5 = vcmp.ge.f32.partialorder %v195_v20, 0.0  ;;  %v249_v26 = vmul.f32 0.01, %v195_v20 }
  0xe6   :  { %v259_v27 = vsel %vm227_vm2, %v171_v15, %v243_v23  ;;  %v267_v28 = vsel %vm235_vm3, %v203_v16, %v251_v24  ;;  %v174_v29 = vadd.f32 %v345_v21, %v471_v12  ;;  %v206_v30 = vadd.f32 %v353_v22, %v471_v12  ;;  %v165_v31 = vpop.f32.mrb[3].mxu0  ;;  %v197_v32 = vpop.f32.mrb[3].mxu1 }
  0xe7   :  { %275 = vst [vmem:[#allocation2 + $0x10] sm:$0xff] %v259_v27  ;;  %283 = vst [vmem:[#allocation2 + $0x50] sm:$0xff] %v267_v28  ;;  %v257_v33 = vsel %vm225_vm4, %v163_v19, %v241_v25  ;;  %v265_v34 = vsel %vm233_vm5, %v195_v20, %v249_v26  ;;  %v166_v35 = vadd.f32 %v471_v12, %v165_v31 }
  0xe8   :  { %v198_v36 = vadd.f32 %v471_v12, %v197_v32  ;;  %273 = vst [vmem:[#allocation2] sm:$0xff] %v257_v33  ;;  %281 = vst [vmem:[#allocation2 + $0x40] sm:$0xff] %v265_v34  ;;  %vm228_vm6 = vcmp.ge.f32.partialorder %v174_v29, 0.0  ;;  %v244_v37 = vmul.f32 0.01, %v174_v29  ;;  %vm236_vm7 = vcmp.ge.f32.partialorder %v206_v30, 0.0 }
  0xe9   :  { %v252_v38 = vmul.f32 0.01, %v206_v30  ;;  %vm226_vm8 = vcmp.ge.f32.partialorder %v166_v35, 0.0  ;;  %v242_v39 = vmul.f32 0.01, %v166_v35  ;;  %v348_v43 = vpop.f32.mrb[4].mxu0 }
  0xea   :  { %vm234_vm9 = vcmp.ge.f32.partialorder %v198_v36, 0.0  ;;  %v250_v40 = vmul.f32 0.01, %v198_v36  ;;  %v260_v41 = vsel %vm228_vm6, %v174_v29, %v244_v37  ;;  %v356_v44 = vpop.f32.mrb[4].mxu1  ;;  %v187_v47 = vadd.f32 %v348_v43, %v471_v12  ;;  %v178_v49 = vpop.f32.mrb[5].mxu0 }
  0xeb   :  { %v268_v42 = vsel %vm236_vm7, %v206_v30, %v252_v38  ;;  %276 = vst [vmem:[#allocation2 + $0x18] sm:$0xff] %v260_v41  ;;  %v258_v45 = vsel %vm226_vm8, %v166_v35, %v242_v39  ;;  %v219_v48 = vadd.f32 %v356_v44, %v471_v12  ;;  %v210_v50 = vpop.f32.mrb[5].mxu1  ;;  %v179_v51 = vadd.f32 %v471_v12, %v178_v49  ;;  %v349_v53 = vpop.f32.mrb[6].mxu0 }
  0xec   :  { %284 = vst [vmem:[#allocation2 + $0x58] sm:$0xff] %v268_v42  ;;  %v266_v46 = vsel %vm234_vm9, %v198_v36, %v250_v40  ;;  %274 = vst [vmem:[#allocation2 + $0x8] sm:$0xff] %v258_v45  ;;  %v211_v52 = vadd.f32 %v471_v12, %v210_v50  ;;  %v357_v54 = vpop.f32.mrb[6].mxu1  ;;  %vm231_vm10 = vcmp.ge.f32.partialorder %v187_v47, 0.0  ;;  %v247_v55 = vmul.f32 0.01, %v187_v47 }
  0xed   :  { %282 = vst [vmem:[#allocation2 + $0x48] sm:$0xff] %v266_v46  ;;  %vm239_vm11 = vcmp.ge.f32.partialorder %v219_v48, 0.0  ;;  %v255_v56 = vmul.f32 0.01, %v219_v48  ;;  %vm229_vm12 = vcmp.ge.f32.partialorder %v179_v51, 0.0  ;;  %v190_v61 = vadd.f32 %v349_v53, %v471_v12  ;;  %v181_v63 = vpop.f32.mrb[7].mxu0 }
  0xee   :  { %v245_v57 = vmul.f32 0.01, %v179_v51  ;;  %vm237_vm13 = vcmp.ge.f32.partialorder %v211_v52, 0.0  ;;  %v253_v58 = vmul.f32 0.01, %v211_v52  ;;  %v263_v59 = vsel %vm231_vm10, %v187_v47, %v247_v55  ;;  %v213_v0 = vpop.f32.mrb[7].mxu1 }
  0xef   :  { %v271_v60 = vsel %vm239_vm11, %v219_v48, %v255_v56  ;;  %v222_v62 = vadd.f32 %v357_v54, %v471_v12  ;;  %279 = vst [vmem:[#allocation2 + $0x30] sm:$0xff] %v263_v59  ;;  %v182_v3 = vadd.f32 %v471_v12, %v181_v63  ;;  %v214_v4 = vadd.f32 %v471_v12, %v213_v0 }
  0xf0   :  { %287 = vst [vmem:[#allocation2 + $0x70] sm:$0xff] %v271_v60  ;;  %v261_v1 = vsel %vm229_vm12, %v179_v51, %v245_v57  ;;  %v269_v2 = vsel %vm237_vm13, %v211_v52, %v253_v58  ;;  %vm232_vm14 = vcmp.ge.f32.partialorder %v190_v61, 0.0  ;;  %v248_v5 = vmul.f32 0.01, %v190_v61 }
  0xf1   :  { %277 = vst [vmem:[#allocation2 + $0x20] sm:$0xff] %v261_v1  ;;  %285 = vst [vmem:[#allocation2 + $0x60] sm:$0xff] %v269_v2  ;;  %vm240_vm15 = vcmp.ge.f32.partialorder %v222_v62, 0.0  ;;  %v256_v6 = vmul.f32 0.01, %v222_v62  ;;  %vm230_vm0 = vcmp.ge.f32.partialorder %v182_v3, 0.0 }
  0xf2   :  { %v246_v7 = vmul.f32 0.01, %v182_v3  ;;  %vm238_vm1 = vcmp.ge.f32.partialorder %v214_v4, 0.0  ;;  %v254_v8 = vmul.f32 0.01, %v214_v4  ;;  %v264_v9 = vsel %vm232_vm14, %v190_v61, %v248_v5 }
  0xf3   :  { %v272_v10 = vsel %vm240_vm15, %v222_v62, %v256_v6  ;;  %280 = vst [vmem:[#allocation2 + $0x38] sm:$0xff] %v264_v9 }
  0xf4   :  { %288 = vst [vmem:[#allocation2 + $0x78] sm:$0xff] %v272_v10  ;;  %v262_v11 = vsel %vm230_vm0, %v182_v3, %v246_v7  ;;  %v270_v13 = vsel %vm238_vm1, %v214_v4, %v254_v8 }
  0xf5   :  { %278 = vst [vmem:[#allocation2 + $0x28] sm:$0xff] %v262_v11  ;;  %286 = vst [vmem:[#allocation2 + $0x68] sm:$0xff] %v270_v13 }
  0xf6   :  { %391 = shalt.err (!%p388_p4)
}
  0xf7   :  { %s392_s11 = scalar_lea.hbm %s504_s3, 2048 }
  0xf8   :  { %p393_p5 = scmp.ne.s32.totalorder %s504_s3, %s392_s11  ;;  %p396_p6 = scmp.lt.u32.totalorder %s392_s11, %s504_s3 }
  0xfa   :  { %p398_p7 = pnand %p396_p6, %p393_p5 }
  0xfc   :  { %401 = shalt.err (!%p398_p7)
}
  0xfd   :  { %s405_s16 = smov 128   ;;  %s406_s17 = smov 8  }
  0xfe   :  { %300 = dma.vmem_to_hbm [thread:$0]  %s295_s2, 2048, %s504_s3, [#allocation3], %s405_s16, %s405_s16, %s406_s17  }
  0xff   :  { %402 = dma.done.wait [#allocation3], 2048  }
 0x100   :  { %403 = vsyncadd [#allocation3], 4294965248 }
 0x101   :  { %304 = vsyncpa [#allocation3], 1 }

</bundles_post_ra>
